<compile_context>
chip_gen: v6e
topology: v6e:2x2x1
jax: 0.10.0
libtpu: 0.0.40
codegen_flags: <defaults>
</compile_context>

<pallas_src>
import functools

import jax
import jax.numpy as jnp
import numpy as np
from jax.experimental import pallas as pl
from jax.experimental.pallas import tpu as pltpu

_LANE = 128
_SUBLANE_BF16 = 16  # bf16 packs 16 sublanes per vreg; keep TB a multiple of it


def _round_up(x, m):
    return ((x + m - 1) // m) * m


def _mlp_kernel(x_ref, w1_ref, b1_ref, w2_ref, b2_ref,
                w3_ref, b3_ref, w4_ref, b4_ref, o_ref):
    # Layer 1: Linear(D_in, H) + ReLU   (Dropout = identity in eval mode)
    x = x_ref[...].astype(jnp.bfloat16)
    h = jnp.dot(x, w1_ref[...], preferred_element_type=jnp.float32)
    h = jnp.maximum(h + b1_ref[...], 0.0).astype(jnp.bfloat16)
    # Layer 2: Linear(H, H) + ReLU
    h = jnp.dot(h, w2_ref[...], preferred_element_type=jnp.float32)
    h = jnp.maximum(h + b2_ref[...], 0.0).astype(jnp.bfloat16)
    # Layer 3: Linear(H, H) + ReLU
    h = jnp.dot(h, w3_ref[...], preferred_element_type=jnp.float32)
    h = jnp.maximum(h + b3_ref[...], 0.0).astype(jnp.bfloat16)
    # Layer 4: Linear(H, nlabel padded to 128 lanes) + Sigmoid, bf16 lane-dense store
    z = jnp.dot(h, w4_ref[...], preferred_element_type=jnp.float32)
    o_ref[...] = jax.nn.sigmoid(z + b4_ref[...]).astype(o_ref.dtype)


def prepare_params(params):
    """One-time layout prep (kept OUT of the per-call jitted path):
       - transpose PyTorch (out,in) weights to (in,out) so the kernel is x @ W
       - cast weights to bf16 (native MXU path); keep biases f32, shaped (1,out)
       - zero-pad the last layer's output dim to a 128-lane multiple so the
         kernel's output stores are lane-dense (unmasked vst)."""
    nlabel = int(params["w4"].shape[0])
    h4 = int(params["w4"].shape[1])
    n_pad = _round_up(max(nlabel, _LANE), _LANE)
    w4 = jnp.zeros((h4, n_pad), jnp.float32).at[:, :nlabel].set(params["w4"].T)
    b4 = jnp.zeros((1, n_pad), jnp.float32).at[0, :nlabel].set(params["b4"])
    prepared = dict(
        w1=jnp.asarray(params["w1"].T, jnp.bfloat16),
        b1=jnp.asarray(params["b1"], jnp.float32).reshape(1, -1),
        w2=jnp.asarray(params["w2"].T, jnp.bfloat16),
        b2=jnp.asarray(params["b2"], jnp.float32).reshape(1, -1),
        w3=jnp.asarray(params["w3"].T, jnp.bfloat16),
        b3=jnp.asarray(params["b3"], jnp.float32).reshape(1, -1),
        w4=w4.astype(jnp.bfloat16),
        b4=b4,
    )
    return prepared, nlabel


@functools.partial(jax.jit, static_argnames=("nlabel", "block_b"))
def classifier3_forward(x, prepared, nlabel, block_b=4096):
    """4-layer MLP + sigmoid as one batch-tiled Pallas call.

    x:        (B, D_in) float (any float dtype; cast to bf16 in-kernel)
    prepared: dict from prepare_params() (bf16 weights (in,out), f32 biases
              (1,out), last layer lane-padded to 128).
    Returns:  (B, nlabel) float32.
    """
    B, D_in = x.shape
    w1, b1 = prepared["w1"], prepared["b1"]
    w2, b2 = prepared["w2"], prepared["b2"]
    w3, b3 = prepared["w3"], prepared["b3"]
    w4, b4 = prepared["w4"], prepared["b4"]
    n_pad = w4.shape[1]

    # Batch tile: big (amortize per-step overhead), multiple of 16 sublanes
    # (bf16 output packing), and capped near B/2 so v7x's two TensorCores both
    # get a grid step for large B.  Tiny batches use a single full-array block.
    if B <= _SUBLANE_BF16:
        tb = B
    else:
        tb = min(block_b, _round_up(pl.cdiv(B, 2), _SUBLANE_BF16))
    grid = (pl.cdiv(B, tb),)   # ragged last block: Pallas clamps reads, masks writes

    resident = lambda shape: pl.BlockSpec(shape, lambda i: (0, 0))

    out = pl.pallas_call(
        _mlp_kernel,
        out_shape=jax.ShapeDtypeStruct((B, n_pad), jnp.bfloat16),
        grid=grid,
        in_specs=[
            pl.BlockSpec((tb, D_in), lambda i: (i, 0)),   # streamed batch tile
            resident(w1.shape), resident(b1.shape),       # weights stay in VMEM
            resident(w2.shape), resident(b2.shape),       # (constant index_map ->
            resident(w3.shape), resident(b3.shape),       #  no re-fetch per step)
            resident(w4.shape), resident(b4.shape),
        ],
        out_specs=pl.BlockSpec((tb, n_pad), lambda i: (i, 0)),
        compiler_params=pltpu.CompilerParams(
            dimension_semantics=("parallel",)),
    )(x, w1, b1, w2, b2, w3, b3, w4, b4)
    # Only the (cheap) lane slice remains in the wrapper; padded lanes hold
    # sigmoid(0)=0.5 and must not be returned to consumers.
    return out[:, :nlabel].astype(jnp.float32)


def init_params(key, nlabel, D_in, H):
    """Deterministic init with PyTorch nn.Linear shape conventions: W (out,in)."""
    ks = jax.random.split(key, 8)
    def lin(kw, kb, fan_in, fan_out):
        bound = 1.0 / np.sqrt(fan_in)
        w = jax.random.uniform(kw, (fan_out, fan_in), jnp.float32, -bound, bound)
        b = jax.random.uniform(kb, (fan_out,), jnp.float32, -bound, bound)
        return w, b
    w1, b1 = lin(ks[0], ks[1], D_in, H)
    w2, b2 = lin(ks[2], ks[3], H, H)
    w3, b3 = lin(ks[4], ks[5], H, H)
    w4, b4 = lin(ks[6], ks[7], H, nlabel)
    return dict(w1=w1, b1=b1, w2=w2, b2=b2, w3=w3, b3=b3, w4=w4, b4=b4)


def reference_forward(x, params):
    h = jnp.maximum(x @ params["w1"].T + params["b1"], 0.0)
    h = jnp.maximum(h @ params["w2"].T + params["b2"], 0.0)
    h = jnp.maximum(h @ params["w3"].T + params["b3"], 0.0)
    z = h @ params["w4"].T + params["b4"]
    return jax.nn.sigmoid(z)


if __name__ == "__main__":
    # Small shapes consistent with the module: batch=8, D_in=32, H=32, nlabel=4
    B, D_in, H, nlabel = 8, 32, 32, 4
    key = jax.random.PRNGKey(0)
    kx, kp, kx2 = jax.random.split(key, 3)
    params = init_params(kp, nlabel, D_in, H)
    prepared, nlabel_p = prepare_params(params)

    # bf16 weights/activations/output -> loosened tolerance (post-sigmoid, abs).
    TOL = 3e-2

    # Case 1: tiny batch (single grid step, block == full array).
    x = jax.random.normal(kx, (B, D_in), jnp.float32)
    out = jax.block_until_ready(classifier3_forward(x, prepared, nlabel_p))
    ref = reference_forward(x, params)
    np.testing.assert_allclose(np.asarray(out), np.asarray(ref),
                               rtol=TOL, atol=TOL)

    # Case 2: ragged larger batch (exercises multi-step grid + clamped/masked
    # partial last block, no wrapper-side padding pass).
    B2 = 300
    x2 = jax.random.normal(kx2, (B2, D_in), jnp.float32)
    out2 = jax.block_until_ready(
        classifier3_forward(x2, prepared, nlabel_p, block_b=128))
    ref2 = reference_forward(x2, params)
    np.testing.assert_allclose(np.asarray(out2), np.asarray(ref2),
                               rtol=TOL, atol=TOL)

    # Case 3: default (large) tile path on the ragged batch.
    out3 = jax.block_until_ready(classifier3_forward(x2, prepared, nlabel_p))
    np.testing.assert_allclose(np.asarray(out3), np.asarray(ref2),
                               rtol=TOL, atol=TOL)

    print("KERNEL_OK")
</pallas_src>

<mosaic_0001>
module attributes {stable_mosaic.version = 11 : i64} {
  func.func @_mlp_kernel(%arg0: i32, %arg1: memref<8x32xf32, #tpu.memory_space<vmem>>, %arg2: memref<32x32xbf16, #tpu.memory_space<vmem>>, %arg3: memref<1x32xf32, #tpu.memory_space<vmem>>, %arg4: memref<32x32xbf16, #tpu.memory_space<vmem>>, %arg5: memref<1x32xf32, #tpu.memory_space<vmem>>, %arg6: memref<32x32xbf16, #tpu.memory_space<vmem>>, %arg7: memref<1x32xf32, #tpu.memory_space<vmem>>, %arg8: memref<32x128xbf16, #tpu.memory_space<vmem>>, %arg9: memref<1x128xf32, #tpu.memory_space<vmem>>, %arg10: memref<8x128xbf16, #tpu.memory_space<vmem>>) attributes {dimension_semantics = [#tpu.dimension_semantics<parallel>], iteration_bounds = array<i64: 1>, scalar_prefetch = 0 : i64, scratch_operands = 0 : i64, tpu.core_type = #tpu.core_type<tc>, window_params = [{transform_indices = @transform_0, window_bounds = array<i64: 8, 32>}, {pipeline_mode = #tpu.pipeline_mode<synchronous>, transform_indices = @transform_1, window_bounds = array<i64: 32, 32>}, {pipeline_mode = #tpu.pipeline_mode<synchronous>, transform_indices = @transform_2, window_bounds = array<i64: 1, 32>}, {pipeline_mode = #tpu.pipeline_mode<synchronous>, transform_indices = @transform_3, window_bounds = array<i64: 32, 32>}, {pipeline_mode = #tpu.pipeline_mode<synchronous>, transform_indices = @transform_4, window_bounds = array<i64: 1, 32>}, {pipeline_mode = #tpu.pipeline_mode<synchronous>, transform_indices = @transform_5, window_bounds = array<i64: 32, 32>}, {pipeline_mode = #tpu.pipeline_mode<synchronous>, transform_indices = @transform_6, window_bounds = array<i64: 1, 32>}, {pipeline_mode = #tpu.pipeline_mode<synchronous>, transform_indices = @transform_7, window_bounds = array<i64: 32, 128>}, {pipeline_mode = #tpu.pipeline_mode<synchronous>, transform_indices = @transform_8, window_bounds = array<i64: 1, 128>}, {transform_indices = @transform_9, window_bounds = array<i64: 8, 128>}]} {
    %c0 = arith.constant 0 : index
    %c0_0 = arith.constant 0 : index
    %0 = vector.load %arg1[%c0, %c0_0] : memref<8x32xf32, #tpu.memory_space<vmem>>, vector<8x32xf32>
    %1 = arith.truncf %0 : vector<8x32xf32> to vector<8x32xbf16>
    %c0_1 = arith.constant 0 : index
    %c0_2 = arith.constant 0 : index
    %2 = vector.load %arg2[%c0_1, %c0_2] : memref<32x32xbf16, #tpu.memory_space<vmem>>, vector<32x32xbf16>
    %cst = arith.constant dense<0.000000e+00> : vector<8x32xf32>
    %3 = tpu.matmul %1, %2, %cst {dimension_numbers = #tpu.dot_dimension_numbers<[1], [0], [0], [1], [0, 0, 1, 1], [], []>} : vector<8x32xbf16>, vector<32x32xbf16>, vector<8x32xf32> -> vector<8x32xf32>
    %c0_3 = arith.constant 0 : index
    %c0_4 = arith.constant 0 : index
    %4 = vector.load %arg3[%c0_3, %c0_4] : memref<1x32xf32, #tpu.memory_space<vmem>>, vector<1x32xf32>
    %5 = vector.broadcast %4 : vector<1x32xf32> to vector<8x32xf32>
    %6 = arith.addf %3, %5 : vector<8x32xf32>
    %cst_5 = arith.constant 0.000000e+00 : f32
    %7 = vector.broadcast %cst_5 : f32 to vector<8x32xf32>
    %8 = arith.maximumf %6, %7 : vector<8x32xf32>
    %9 = arith.truncf %8 : vector<8x32xf32> to vector<8x32xbf16>
    %c0_6 = arith.constant 0 : index
    %c0_7 = arith.constant 0 : index
    %10 = vector.load %arg4[%c0_6, %c0_7] : memref<32x32xbf16, #tpu.memory_space<vmem>>, vector<32x32xbf16>
    %cst_8 = arith.constant dense<0.000000e+00> : vector<8x32xf32>
    %11 = tpu.matmul %9, %10, %cst_8 {dimension_numbers = #tpu.dot_dimension_numbers<[1], [0], [0], [1], [0, 0, 1, 1], [], []>} : vector<8x32xbf16>, vector<32x32xbf16>, vector<8x32xf32> -> vector<8x32xf32>
    %c0_9 = arith.constant 0 : index
    %c0_10 = arith.constant 0 : index
    %12 = vector.load %arg5[%c0_9, %c0_10] : memref<1x32xf32, #tpu.memory_space<vmem>>, vector<1x32xf32>
    %13 = vector.broadcast %12 : vector<1x32xf32> to vector<8x32xf32>
    %14 = arith.addf %11, %13 : vector<8x32xf32>
    %cst_11 = arith.constant 0.000000e+00 : f32
    %15 = vector.broadcast %cst_11 : f32 to vector<8x32xf32>
    %16 = arith.maximumf %14, %15 : vector<8x32xf32>
    %17 = arith.truncf %16 : vector<8x32xf32> to vector<8x32xbf16>
    %c0_12 = arith.constant 0 : index
    %c0_13 = arith.constant 0 : index
    %18 = vector.load %arg6[%c0_12, %c0_13] : memref<32x32xbf16, #tpu.memory_space<vmem>>, vector<32x32xbf16>
    %cst_14 = arith.constant dense<0.000000e+00> : vector<8x32xf32>
    %19 = tpu.matmul %17, %18, %cst_14 {dimension_numbers = #tpu.dot_dimension_numbers<[1], [0], [0], [1], [0, 0, 1, 1], [], []>} : vector<8x32xbf16>, vector<32x32xbf16>, vector<8x32xf32> -> vector<8x32xf32>
    %c0_15 = arith.constant 0 : index
    %c0_16 = arith.constant 0 : index
    %20 = vector.load %arg7[%c0_15, %c0_16] : memref<1x32xf32, #tpu.memory_space<vmem>>, vector<1x32xf32>
    %21 = vector.broadcast %20 : vector<1x32xf32> to vector<8x32xf32>
    %22 = arith.addf %19, %21 : vector<8x32xf32>
    %cst_17 = arith.constant 0.000000e+00 : f32
    %23 = vector.broadcast %cst_17 : f32 to vector<8x32xf32>
    %24 = arith.maximumf %22, %23 : vector<8x32xf32>
    %25 = arith.truncf %24 : vector<8x32xf32> to vector<8x32xbf16>
    %c0_18 = arith.constant 0 : index
    %c0_19 = arith.constant 0 : index
    %26 = vector.load %arg8[%c0_18, %c0_19] : memref<32x128xbf16, #tpu.memory_space<vmem>>, vector<32x128xbf16>
    %cst_20 = arith.constant dense<0.000000e+00> : vector<8x128xf32>
    %27 = tpu.matmul %25, %26, %cst_20 {dimension_numbers = #tpu.dot_dimension_numbers<[1], [0], [0], [1], [0, 0, 1, 1], [], []>} : vector<8x32xbf16>, vector<32x128xbf16>, vector<8x128xf32> -> vector<8x128xf32>
    %c0_21 = arith.constant 0 : index
    %c0_22 = arith.constant 0 : index
    %28 = vector.load %arg9[%c0_21, %c0_22] : memref<1x128xf32, #tpu.memory_space<vmem>>, vector<1x128xf32>
    %29 = vector.broadcast %28 : vector<1x128xf32> to vector<8x128xf32>
    %30 = arith.addf %27, %29 : vector<8x128xf32>
    %31 = arith.negf %30 : vector<8x128xf32>
    %32 = math.exp %31 : vector<8x128xf32>
    %cst_23 = arith.constant 1.000000e+00 : f32
    %33 = vector.broadcast %cst_23 : f32 to vector<8x128xf32>
    %34 = arith.addf %33, %32 : vector<8x128xf32>
    %35 = arith.divf %33, %34 : vector<8x128xf32>
    %36 = arith.truncf %35 : vector<8x128xf32> to vector<8x128xbf16>
    %c0_24 = arith.constant 0 : index
    %c0_25 = arith.constant 0 : index
    %37 = vector.load %arg10[%c0_24, %c0_25] : memref<8x128xbf16, #tpu.memory_space<vmem>>, vector<8x128xbf16>
    tpu.vector_store %arg10[%c0_24, %c0_25], %36 {strides = array<i32>} : memref<8x128xbf16, #tpu.memory_space<vmem>>, vector<8x128xbf16>,
    return
  }
  func.func @transform_0(%arg0: i32) -> (i32, i32) {
    %c0_i32 = arith.constant 0 : i32
    %c0_i32_0 = arith.constant 0 : i32
    return %arg0, %c0_i32 : i32, i32
  }
  func.func @transform_1(%arg0: i32) -> (i32, i32) {
    %c0_i32 = arith.constant 0 : i32
    %c0_i32_0 = arith.constant 0 : i32
    %c0_i32_1 = arith.constant 0 : i32
    return %c0_i32, %c0_i32_0 : i32, i32
  }
  func.func @transform_2(%arg0: i32) -> (i32, i32) {
    %c0_i32 = arith.constant 0 : i32
    %c0_i32_0 = arith.constant 0 : i32
    %c0_i32_1 = arith.constant 0 : i32
    return %c0_i32, %c0_i32_0 : i32, i32
  }
  func.func @transform_3(%arg0: i32) -> (i32, i32) {
    %c0_i32 = arith.constant 0 : i32
    %c0_i32_0 = arith.constant 0 : i32
    %c0_i32_1 = arith.constant 0 : i32
    return %c0_i32, %c0_i32_0 : i32, i32
  }
  func.func @transform_4(%arg0: i32) -> (i32, i32) {
    %c0_i32 = arith.constant 0 : i32
    %c0_i32_0 = arith.constant 0 : i32
    %c0_i32_1 = arith.constant 0 : i32
    return %c0_i32, %c0_i32_0 : i32, i32
  }
  func.func @transform_5(%arg0: i32) -> (i32, i32) {
    %c0_i32 = arith.constant 0 : i32
    %c0_i32_0 = arith.constant 0 : i32
    %c0_i32_1 = arith.constant 0 : i32
    return %c0_i32, %c0_i32_0 : i32, i32
  }
  func.func @transform_6(%arg0: i32) -> (i32, i32) {
    %c0_i32 = arith.constant 0 : i32
    %c0_i32_0 = arith.constant 0 : i32
    %c0_i32_1 = arith.constant 0 : i32
    return %c0_i32, %c0_i32_0 : i32, i32
  }
  func.func @transform_7(%arg0: i32) -> (i32, i32) {
    %c0_i32 = arith.constant 0 : i32
    %c0_i32_0 = arith.constant 0 : i32
    %c0_i32_1 = arith.constant 0 : i32
    return %c0_i32, %c0_i32_0 : i32, i32
  }
  func.func @transform_8(%arg0: i32) -> (i32, i32) {
    %c0_i32 = arith.constant 0 : i32
    %c0_i32_0 = arith.constant 0 : i32
    %c0_i32_1 = arith.constant 0 : i32
    return %c0_i32, %c0_i32_0 : i32, i32
  }
  func.func @transform_9(%arg0: i32) -> (i32, i32) {
    %c0_i32 = arith.constant 0 : i32
    %c0_i32_0 = arith.constant 0 : i32
    return %arg0, %c0_i32 : i32, i32
  }
}

</mosaic_0001>

<bundles_post_ra>
// kernel: classifier3_forward.1
= control target key start
LH: loop header
LB: loop body
LE: loop exit
PB: predicated region body
PF: predicated region fallthrough
CT: control target
= control target key end

     0   :  { %14 = vsyncpa [#allocation3], 0  ;;  %s684_s0 = inlined_call_operand.hbm [shape: f32[8,32], index: 0, kind: input, shape index: {}]   ;;  %s685_s1 = inlined_call_operand.hbm [shape: bf16[32,32], index: 1, kind: input, shape index: {}]   ;;  %s686_s2 = inlined_call_operand.vmem [shape: f32[1,32], index: 2, kind: input, shape index: {}]   ;;  %s687_s3 = inlined_call_operand.hbm [shape: bf16[32,32], index: 3, kind: input, shape index: {}]   ;;  %s688_s4 = inlined_call_operand.vmem [shape: f32[1,32], index: 4, kind: input, shape index: {}]   ;;  %s689_s5 = inlined_call_operand.hbm [shape: bf16[32,32], index: 5, kind: input, shape index: {}]   ;;  %s690_s6 = inlined_call_operand.vmem [shape: f32[1,32], index: 6, kind: input, shape index: {}]   ;;  %s691_s7 = inlined_call_operand.hbm [shape: bf16[32,128], index: 7, kind: input, shape index: {}]   ;;  %s692_s8 = inlined_call_operand.vmem [shape: f32[1,128], index: 8, kind: input, shape index: {}]   ;;  %s693_s9 = inlined_call_operand.vmem [shape: bf16[8,128], index: 9, kind: output, shape index: {}]  }
   0x1   :  { %15 = vsyncpa [#allocation5], 0 }
   0x2   :  { %16 = vsyncpa [#allocation8], 0  ;;  %s575_s30 = smov [#allocation4]  }
   0x3   :  { %s32_s10 = sshll.u32 %s575_s30, 4  ;;  %s33_s10 = int_to_ptr.vmem [resolvable:$true] %s32_s10 }
   0x4   :  { %s477_s11 = scalar_lea.vmem %s33_s10, 256  ;;  %p482_p1 = scmp.lt.s32.totalorder %s33_s10, %s33_s10 }
   0x5   :  { %p478_p0 = scmp.ne.s32.totalorder %s33_s10, %s477_s11  ;;  %p483_p2 = scmp.lt.s32.totalorder %s477_s11, %s477_s11 }
   0x7   :  { %p484_p3 = por %p483_p2, %p482_p1 }
   0x9   :  { %p485_p4 = pnand %p484_p3, %p478_p0 }
   0xb   :  { %488 = shalt.err (!%p485_p4)
}
   0xc   :  { %s576_s12 = smov 64   ;;  %s577_s13 = smov 4  }
   0xd   :  { %38 = dma.hbm_to_vmem [thread:$0]  %s685_s1, 256, %s33_s10, [#allocation5], %s576_s12, %s576_s12, %s577_s13  }
   0xe   :  { %s578_s16 = smov [#allocation7]   ;;  %s579_s18 = smov [#allocation2]  }
   0xf   :  { %s60_s17 = sshll.u32 %s578_s16, 4  ;;  %s23_s19 = sshll.u32 %s579_s18, 4  ;;  %s61_s17 = int_to_ptr.vmem [resolvable:$true] %s60_s17  ;;  %s24_s19 = int_to_ptr.vmem [resolvable:$true] %s23_s19 }
  0x10   :  { %s497_s20 = scalar_lea.vmem %s61_s17, 256  ;;  %p502_p6 = scmp.lt.s32.totalorder %s61_s17, %s61_s17 }
  0x11   :  { %p498_p5 = scmp.ne.s32.totalorder %s61_s17, %s497_s20  ;;  %p503_p7 = scmp.lt.s32.totalorder %s497_s20, %s497_s20 }
  0x13   :  { %p504_p8 = por %p503_p7, %p502_p6 }
  0x15   :  { %p505_p9 = pnand %p504_p8, %p498_p5 }
  0x17   :  { %508 = shalt.err (!%p505_p9)
}
  0x18   :  { %66 = dma.hbm_to_vmem [thread:$0]  %s689_s5, 256, %s61_s17, [#allocation8], %s576_s12, %s576_s12, %s577_s13  }
  0x19   :  { %s517_s1 = scalar_lea.vmem %s24_s19, 128  ;;  %p522_p11 = scmp.lt.s32.totalorder %s24_s19, %s24_s19 }
  0x1a   :  { %p518_p10 = scmp.ne.s32.totalorder %s24_s19, %s517_s1  ;;  %p523_p12 = scmp.lt.s32.totalorder %s517_s1, %s517_s1 }
  0x1c   :  { %p524_p13 = por %p523_p12, %p522_p11 }
  0x1e   :  { %p525_p0 = pnand %p524_p13, %p518_p10 }
  0x20   :  { %528 = shalt.err (!%p525_p0)
}
  0x21   :  { %26 = dma.hbm_to_vmem [thread:$0]  %s684_s0, 128, %s24_s19, [#allocation3]  }
  0x22   :  { %s580_s25 = smov [#allocation6]   ;;  %s581_s27 = smov [#allocation9]  }
  0x23   :  { %s46_s26 = sshll.u32 %s580_s25, 4  ;;  %s74_s28 = sshll.u32 %s581_s27, 4  ;;  %s47_s26 = int_to_ptr.vmem [resolvable:$true] %s46_s26  ;;  %s75_s28 = int_to_ptr.vmem [resolvable:$true] %s74_s28 }
  0x24   :  { %s537_s29 = scalar_lea.vmem %s47_s26, 256  ;;  %p542_p2 = scmp.lt.s32.totalorder %s47_s26, %s47_s26 }
  0x25   :  { %p538_p1 = scmp.ne.s32.totalorder %s47_s26, %s537_s29  ;;  %p543_p3 = scmp.lt.s32.totalorder %s537_s29, %s537_s29 }
  0x27   :  { %p544_p4 = por %p543_p3, %p542_p2 }
  0x29   :  { %p545_p5 = pnand %p544_p4, %p538_p1 }
  0x2b   :  { %548 = shalt.err (!%p545_p5)
}
  0x2c   :  { %52 = dma.hbm_to_vmem [thread:$0]  %s687_s3, 256, %s47_s26, [#allocation5], %s576_s12, %s576_s12, %s577_s13  }
  0x2d   :  { %s557_s0 = scalar_lea.vmem %s75_s28, 256  ;;  %p562_p7 = scmp.lt.s32.totalorder %s75_s28, %s75_s28 }
  0x2e   :  { %p558_p6 = scmp.ne.s32.totalorder %s75_s28, %s557_s0  ;;  %p563_p8 = scmp.lt.s32.totalorder %s557_s0, %s557_s0 }
  0x30   :  { %p564_p9 = por %p563_p8, %p562_p7 }
  0x32   :  { %p565_p10 = pnand %p564_p9, %p558_p6 }
  0x34   :  { %568 = shalt.err (!%p565_p10)
}
  0x35   :  { %80 = dma.hbm_to_vmem [thread:$0]  %s691_s7, 256, %s75_s28, [#allocation8], %s576_s12, %s576_s12, %s577_s13  }
  0x36   :  { %569 = dma.done.wait [#allocation3], 128  }
  0x37   :  { %570 = vsyncadd [#allocation3], 4294967168 }
  0x38   :  { %571 = dma.done.wait [#allocation5], 512  }
  0x39   :  { %572 = vsyncadd [#allocation5], 4294966784 }
  0x3a   :  { %573 = dma.done.wait [#allocation8], 512  }
  0x3b   :  { %574 = vsyncadd [#allocation8], 4294966784  ;;  %v582_v0 = vmov 0.0   ;;  %vm583_vm0 = vmmov 0   ;;  %v457_v1 = vld [vmem:[#allocation4 + $0x8] sm:$0xff]   ;;  %v458_v2 = vld [vmem:[#allocation4] sm:$0xff]  }
  0x3c   :  { %416 = vmatprep.subr.bf16.mxu0 %v582_v0  ;;  %420 = vmatprep.mubr.msk.bf16.mxu0 %vm583_vm0, %v582_v0  ;;  %v99_v3 = vld [vmem:[#allocation2] sm:$0xff]  ;;  %vm124_vm1 = vcmask 261120   ;;  %v460_v6 = vld [vmem:[#allocation6] sm:$0xff]   ;;  %v461_v7 = vld [vmem:[#allocation7 + $0x8] sm:$0xff]  }
  0x3d   :  { %424 = vmatprep.subr.bf16.mxu1 %v582_v0  ;;  %428 = vmatprep.mubr.msk.bf16.mxu1 %vm583_vm0, %v582_v0  ;;  %v100_v4 = vpack.c.bf16 %v99_v3, %v99_v3  ;;  %v459_v5 = vld [vmem:[#allocation6 + $0x8] sm:$0xff]   ;;  %v462_v16 = vld [vmem:[#allocation7] sm:$0xff]   ;;  %v464_v26 = vld [vmem:[#allocation9] sm:$0xff]  }
  0x3e   :  { %417 = vmatpush3.bf16.msra.mxu0 %v457_v1  ;;  %425 = vmatpush3.bf16.msra.mxu1 %v459_v5  ;;  %v387_v8 = vld [vmem:[%s686_s2] ss:$0 sm:$0xff] }
  0x3f   :  { %418 = vmatprep.subr.bf16.mxu0 %v582_v0  ;;  %426 = vmatprep.subr.bf16.mxu1 %v582_v0  ;;  %v463_v17 = vld [vmem:[#allocation9 + $0x8] sm:$0xff]  }
  0x40   :  { %v391_v18 = vld [vmem:[%s688_s4] ss:$0 sm:$0xff] }
  0x41   :  { %v395_v27 = vld [vmem:[%s690_s6] ss:$0 sm:$0xff] }
  0x42   :  { %419 = vmatpush3.bf16.msra.mxu0 %v458_v2  ;;  %427 = vmatpush3.bf16.msra.mxu1 %v460_v6  ;;  %v399_v35 = vld [vmem:[%s692_s8] ss:$0 sm:$0xff] }
  0x43   :  { %432 = vmatprep.subr.bf16.mxu0 %v582_v0  ;;  %440 = vmatprep.subr.bf16.mxu1 %v582_v0 }
  0x45   :  { %421 = vmatmul.mubr.msk.bf16.vlgmr.msra.gmra.mxu0 %vm124_vm1, %v100_v4 }
  0x46   :  { %436 = vmatprep.mubr.msk.bf16.mxu0 %vm583_vm0, %v582_v0  ;;  %433 = vmatpush3.bf16.msra.mxu0 %v461_v7 }
  0x47   :  { %434 = vmatprep.subr.bf16.mxu0 %v582_v0 }
  0x4a   :  { %435 = vmatpush3.bf16.msra.mxu0 %v462_v16 }
 0x105   :  { %v162_v9 = vpop.f32.mrf.mxu0 }
 0x106   :  { %v163_v10 = vadd.f32 %v387_v8, %v162_v9 }
 0x107   :  { %v422_v11 = vpop.f32.mrf.mxu0 }
 0x108   :  { %v168_v12 = vmax.f32 %v163_v10, 0.0 }
 0x109   :  { %v165_v13 = vpop.f32.mrf.mxu0 }
 0x10a   :  { %v169_v14 = vpack.c.bf16 %v168_v12, %v168_v12 }
 0x10b   :  { %v423_v15 = vpop.f32.mrf.mxu0 }
 0x10c   :  { %429 = vmatmul.mubr.msk.bf16.vlgmr.msra.gmra.mxu1 %vm124_vm1, %v169_v14 }
 0x10d   :  { %444 = vmatprep.mubr.msk.bf16.mxu1 %vm583_vm0, %v582_v0  ;;  %441 = vmatpush3.bf16.msra.mxu1 %v463_v17 }
 0x10e   :  { %442 = vmatprep.subr.bf16.mxu1 %v582_v0 }
 0x111   :  { %443 = vmatpush3.bf16.msra.mxu1 %v464_v26 }
 0x1cc   :  { %v230_v19 = vpop.f32.mrf.mxu1 }
 0x1cd   :  { %v231_v20 = vadd.f32 %v391_v18, %v230_v19 }
 0x1ce   :  { %v430_v21 = vpop.f32.mrf.mxu1 }
 0x1cf   :  { %v236_v22 = vmax.f32 %v231_v20, 0.0 }
 0x1d0   :  { %v233_v23 = vpop.f32.mrf.mxu1 }
 0x1d1   :  { %v237_v24 = vpack.c.bf16 %v236_v22, %v236_v22 }
 0x1d2   :  { %v431_v25 = vpop.f32.mrf.mxu1 }
 0x1d3   :  { %437 = vmatmul.mubr.msk.bf16.vlgmr.msra.gmra.mxu0 %vm124_vm1, %v237_v24 }
 0x293   :  { %v298_v28 = vpop.f32.mrf.mxu0 }
 0x294   :  { %v299_v29 = vadd.f32 %v395_v27, %v298_v28 }
 0x295   :  { %v438_v30 = vpop.f32.mrf.mxu0 }
 0x296   :  { %v304_v31 = vmax.f32 %v299_v29, 0.0 }
 0x297   :  { %v301_v32 = vpop.f32.mrf.mxu0 }
 0x298   :  { %v305_v33 = vpack.c.bf16 %v304_v31, %v304_v31 }
 0x299   :  { %v439_v34 = vpop.f32.mrf.mxu0 }
 0x29a   :  { %445 = vmatmul.mubr.msk.bf16.vlgmr.msra.gmra.mxu1 %vm124_vm1, %v305_v33 }
 0x35a   :  { %v366_v36 = vpop.f32.mrf.mxu1 }
 0x35b   :  { %v367_v37 = vadd.f32 %v399_v35, %v366_v36 }
 0x35c   :  { %v446_v38 = vpop.f32.mrf.mxu1 }
 0x35d   :  { %v403_v39 = vmul.f32 -1.442695, %v367_v37 }
 0x35e   :  { %v369_v40 = vpop.f32.mrf.mxu1 }
 0x35f   :  { %465 = vpow2.f32 %v403_v39 }
 0x360   :  { %v447_v41 = vpop.f32.mrf.mxu1 }
 0x36c   :  { %v466_v42 = vpop.eup %465 }
 0x36d   :  { %v375_v43 = vadd.f32 1.0, %v466_v42 }
 0x36f   :  { %467 = vrcp.f32 %v375_v43 }
 0x37c   :  { %v468_v44 = vpop.eup %467 }
 0x37d   :  { %v378_v45 = vpack.c.bf16 %v468_v44, %v468_v44 }
 0x37f   :  { %379 = vst [vmem:[%s693_s9] sm:$0xf] %v378_v45 }
 0x380   :  { %384 = vsyncpa [#allocation3], 1 }
 0x381   :  { %385 = vsyncpa [#allocation5], 1 }
 0x382   :  { %386 = vsyncpa [#allocation8], 1 }

</bundles_post_ra>
